<compile_context>
chip_gen: v7x
topology: tpu7x:2x2x1
jax: 0.10.0
libtpu: 0.0.40
codegen_flags: <defaults>
</compile_context>

<pallas_src>
import functools

import jax
import jax.numpy as jnp
from jax.experimental import pallas as pl
from jax.experimental.pallas import tpu as pltpu


def _round_up(v: int, m: int) -> int:
    return ((v + m - 1) // m) * m


def _adain_kernel(x_ref, y_ref, o_ref, *, epsilon, feat_dim, native_apply):
    x32 = x_ref[...].astype(jnp.float32)
    y32 = y_ref[...].astype(jnp.float32)

    inv_d = jnp.float32(1.0 / feat_dim)
    # torch.var default is unbiased (correction=1). The max() guard makes
    # D == 1 produce finite output instead of torch's NaN (documented delta).
    inv_denom = jnp.float32(1.0 / max(feat_dim - 1, 1))

    # Single-pass stats: one sweep per input (sum and sum-of-squares), then
    # var = (sumsq - sum * mean) / (D - 1).  Clamp for cancellation safety.
    sx = jnp.sum(x32, axis=-1, keepdims=True)                    # [tb, 1]
    sxx = jnp.sum(x32 * x32, axis=-1, keepdims=True)
    x_mean = sx * inv_d
    x_var = jnp.maximum((sxx - sx * x_mean) * inv_denom, 0.0)
    inv_x_std = jax.lax.rsqrt(x_var + epsilon)                   # EUP, ~free

    sy = jnp.sum(y32, axis=-1, keepdims=True)
    syy = jnp.sum(y32 * y32, axis=-1, keepdims=True)
    y_mean = sy * inv_d
    y_var = jnp.maximum((syy - sy * y_mean) * inv_denom, 0.0)
    y_std = jnp.sqrt(y_var + epsilon)

    # Fold per-row scalars: out = x * scale + bias
    #   scale = y_std / x_std,  bias = y_mean - x_mean * scale
    scale = y_std * inv_x_std                                    # [tb, 1]
    bias = y_mean - x_mean * scale                               # [tb, 1]

    if native_apply:
        # bf16-native apply (v6e/v7x): widest pass runs 2 elem/lane on the VPU.
        o_ref[...] = (x_ref[...] * scale.astype(o_ref.dtype)
                      + bias.astype(o_ref.dtype))
    else:
        o_ref[...] = (x32 * scale + bias).astype(o_ref.dtype)


def _use_native_apply(dtype) -> bool:
    """bf16-native apply only where the VPU is bf16-native (v6e / v7x)."""
    if jnp.dtype(dtype) != jnp.dtype(jnp.bfloat16):
        return False
    try:
        kind = jax.devices()[0].device_kind.lower()
    except Exception:
        return False
    return ("v6" in kind) or ("v7" in kind)


def _pick_batch_tile(B: int, D: int, itemsize: int) -> int:
    """VMEM-budget-aware batch tile, rounded to the dtype's sublane packing."""
    # Native sublane packing: 8 rows (32-bit), 16 rows (16-bit), 32 rows (8-bit).
    packing = 8 * max(1, 4 // itemsize)

    # Per grid step: x, y, out tiles double-buffered in the input dtype
    # (BlockSpec pipelining) plus ~4 full-width f32 temporaries in the body
    # (x32, x32*x32, y32, pre-cast output). ~14 MiB keeps well inside v7x's
    # 64 MiB physical VMEM with double buffering.
    budget_bytes = 14 << 20
    bytes_per_row = D * (6 * itemsize + 4 * 4)
    tb = max(budget_bytes // max(bytes_per_row, 1), packing)

    # Per-step input DMA in the ~1-4 MiB sweet spot; larger tiles only cost
    # VMEM headroom once the grid is long enough.
    tile_cap_rows = max((4 << 20) // max(D * itemsize, 1), packing)
    tb = min(tb, tile_cap_rows, 2048)

    # Keep >= 8 grid steps (>= 4 per TensorCore on v7x) when the batch allows,
    # so the first/last tiles' DMAs are not left exposed.
    min_steps = 8
    if B >= min_steps * packing:
        tb = min(tb, max(packing, B // min_steps))

    # Round to native packing and never exceed the (padded) batch.
    tb = max((tb // packing) * packing, packing)
    tb = min(tb, _round_up(B, packing))
    return max(tb, packing)


def adain(x: jax.Array, y: jax.Array, epsilon: float = 1e-5) -> jax.Array:
    assert x.shape == y.shape and x.ndim == 2, "AdaIN kernel expects [B, D] inputs"
    B, D = x.shape
    assert D >= 1

    # Lane-dense stores: zero-pad D to a multiple of 128. Zero pad-lanes add
    # nothing to sum / sum-of-squares, so the in-kernel math stays exact as
    # long as feat_dim (the true D) is used for the 1/D and 1/(D-1) factors.
    D_pad = _round_up(D, 128)
    if D_pad != D:
        pad = ((0, 0), (0, D_pad - D))
        x_in = jnp.pad(x, pad)
        y_in = jnp.pad(y, pad)
    else:
        x_in, y_in = x, y

    itemsize = jnp.dtype(x.dtype).itemsize
    tb = _pick_batch_tile(B, D_pad, itemsize)
    grid = (pl.cdiv(B, tb),)  # partial last block is masked on writeback

    kernel = functools.partial(
        _adain_kernel,
        epsilon=float(epsilon),
        feat_dim=D,
        native_apply=_use_native_apply(x.dtype),
    )

    cost = pl.CostEstimate(
        flops=8 * B * D,                      # sum + sum-of-squares + apply
        transcendentals=2 * B,                # rsqrt(x) + sqrt(y) per row
        bytes_accessed=3 * B * D * itemsize,  # read x, read y, write out
    )

    out = pl.pallas_call(
        kernel,
        out_shape=jax.ShapeDtypeStruct((B, D_pad), x.dtype),
        grid_spec=pltpu.PrefetchScalarGridSpec(
            num_scalar_prefetch=0,
            grid=grid,
            in_specs=[
                pl.BlockSpec((tb, D_pad), lambda i: (i, 0)),
                pl.BlockSpec((tb, D_pad), lambda i: (i, 0)),
            ],
            out_specs=pl.BlockSpec((tb, D_pad), lambda i: (i, 0)),
        ),
        compiler_params=pltpu.CompilerParams(
            dimension_semantics=("parallel",),
            # Raise the scoped VMEM limit (v5e default is only 16 MiB) while
            # leaving Mosaic-internal scratch headroom on v7x (64 MiB physical).
            vmem_limit_bytes=40 << 20,
        ),
        cost_estimate=cost,
    )(x_in, y_in)

    if D_pad != D:
        out = out[:, :D]
    return out


def _adain_ref(x, y, epsilon=1e-5):
    # Pure-JAX reference mirroring the PyTorch forward (unbiased variance).
    def stats(a):
        m = jnp.mean(a, axis=1)
        v = jnp.var(a, axis=1, ddof=1)
        return m, jnp.sqrt(v + epsilon)

    xm, xs = stats(x)
    ym, ys = stats(y)
    return (x - xm[:, None]) / xs[:, None] * ys[:, None] + ym[:, None]


if __name__ == "__main__":
    key = jax.random.PRNGKey(0)
    kx, ky = jax.random.split(key)

    # Main case: lane-dense D (multiple of 128).
    B, D = 16, 256
    x = jax.random.normal(kx, (B, D), dtype=jnp.float32)
    y = jax.random.normal(ky, (B, D), dtype=jnp.float32) * 2.0 + 0.5

    out = jax.block_until_ready(adain(x, y))
    ref = _adain_ref(x, y)
    assert out.shape == (B, D) and out.dtype == x.dtype
    assert jnp.allclose(out, ref, atol=1e-4, rtol=1e-4), "mismatch vs reference"

    # Secondary case: non-128-aligned D exercises the pad/crop path.
    D2 = 96
    x2 = jax.random.normal(kx, (B, D2), dtype=jnp.float32) + 1.5
    y2 = jax.random.normal(ky, (B, D2), dtype=jnp.float32) * 0.5 - 0.25
    out2 = jax.block_until_ready(adain(x2, y2))
    ref2 = _adain_ref(x2, y2)
    assert out2.shape == (B, D2)
    assert jnp.allclose(out2, ref2, atol=1e-4, rtol=1e-4), "mismatch (padded D)"

    print("KERNEL_OK")
</pallas_src>

<mosaic_0001>
module attributes {stable_mosaic.version = 11 : i64} {
  func.func @_adain_kernel(%arg0: i32, %arg1: memref<16x256xf32, #tpu.memory_space<vmem>>, %arg2: memref<16x256xf32, #tpu.memory_space<vmem>>, %arg3: memref<16x256xf32, #tpu.memory_space<vmem>>) attributes {dimension_semantics = [#tpu.dimension_semantics<parallel>], iteration_bounds = array<i64: 1>, scalar_prefetch = 0 : i64, scratch_operands = 0 : i64, tpu.core_type = #tpu.core_type<tc>, window_params = [{transform_indices = @transform_0, window_bounds = array<i64: 16, 256>}, {transform_indices = @transform_1, window_bounds = array<i64: 16, 256>}, {transform_indices = @transform_2, window_bounds = array<i64: 16, 256>}]} {
    %c0 = arith.constant 0 : index
    %c0_0 = arith.constant 0 : index
    %0 = vector.load %arg1[%c0, %c0_0] : memref<16x256xf32, #tpu.memory_space<vmem>>, vector<16x256xf32>
    %c0_1 = arith.constant 0 : index
    %c0_2 = arith.constant 0 : index
    %1 = vector.load %arg2[%c0_1, %c0_2] : memref<16x256xf32, #tpu.memory_space<vmem>>, vector<16x256xf32>
    %cst = arith.constant dense<0.000000e+00> : vector<16xf32>
    %2 = vector.multi_reduction <add>, %0, %cst [1] : vector<16x256xf32> to vector<16xf32>
    %3 = vector.shape_cast %2 : vector<16xf32> to vector<16x1xf32>
    %4 = arith.mulf %0, %0 : vector<16x256xf32>
    %cst_3 = arith.constant dense<0.000000e+00> : vector<16xf32>
    %5 = vector.multi_reduction <add>, %4, %cst_3 [1] : vector<16x256xf32> to vector<16xf32>
    %6 = vector.shape_cast %5 : vector<16xf32> to vector<16x1xf32>
    %cst_4 = arith.constant 3.906250e-03 : f32
    %7 = vector.broadcast %cst_4 : f32 to vector<16x1xf32>
    %8 = arith.mulf %3, %7 : vector<16x1xf32>
    %9 = arith.mulf %3, %8 : vector<16x1xf32>
    %10 = arith.subf %6, %9 : vector<16x1xf32>
    %cst_5 = arith.constant 0.00392156886 : f32
    %11 = vector.broadcast %cst_5 : f32 to vector<16x1xf32>
    %12 = arith.mulf %10, %11 : vector<16x1xf32>
    %cst_6 = arith.constant 0.000000e+00 : f32
    %13 = vector.broadcast %cst_6 : f32 to vector<16x1xf32>
    %14 = arith.maximumf %12, %13 : vector<16x1xf32>
    %cst_7 = arith.constant 9.99999974E-6 : f32
    %15 = vector.broadcast %cst_7 : f32 to vector<16x1xf32>
    %16 = arith.addf %14, %15 : vector<16x1xf32>
    %17 = math.rsqrt %16 : vector<16x1xf32>
    %cst_8 = arith.constant dense<0.000000e+00> : vector<16xf32>
    %18 = vector.multi_reduction <add>, %1, %cst_8 [1] : vector<16x256xf32> to vector<16xf32>
    %19 = vector.shape_cast %18 : vector<16xf32> to vector<16x1xf32>
    %20 = arith.mulf %1, %1 : vector<16x256xf32>
    %cst_9 = arith.constant dense<0.000000e+00> : vector<16xf32>
    %21 = vector.multi_reduction <add>, %20, %cst_9 [1] : vector<16x256xf32> to vector<16xf32>
    %22 = vector.shape_cast %21 : vector<16xf32> to vector<16x1xf32>
    %cst_10 = arith.constant 3.906250e-03 : f32
    %23 = vector.broadcast %cst_10 : f32 to vector<16x1xf32>
    %24 = arith.mulf %19, %23 : vector<16x1xf32>
    %25 = arith.mulf %19, %24 : vector<16x1xf32>
    %26 = arith.subf %22, %25 : vector<16x1xf32>
    %cst_11 = arith.constant 0.00392156886 : f32
    %27 = vector.broadcast %cst_11 : f32 to vector<16x1xf32>
    %28 = arith.mulf %26, %27 : vector<16x1xf32>
    %cst_12 = arith.constant 0.000000e+00 : f32
    %29 = vector.broadcast %cst_12 : f32 to vector<16x1xf32>
    %30 = arith.maximumf %28, %29 : vector<16x1xf32>
    %cst_13 = arith.constant 9.99999974E-6 : f32
    %31 = vector.broadcast %cst_13 : f32 to vector<16x1xf32>
    %32 = arith.addf %30, %31 : vector<16x1xf32>
    %33 = math.sqrt %32 : vector<16x1xf32>
    %34 = arith.mulf %33, %17 : vector<16x1xf32>
    %35 = arith.mulf %8, %34 : vector<16x1xf32>
    %36 = arith.subf %24, %35 : vector<16x1xf32>
    %37 = vector.broadcast %34 : vector<16x1xf32> to vector<16x256xf32>
    %38 = arith.mulf %0, %37 : vector<16x256xf32>
    %39 = vector.broadcast %36 : vector<16x1xf32> to vector<16x256xf32>
    %40 = arith.addf %38, %39 : vector<16x256xf32>
    %c0_14 = arith.constant 0 : index
    %c0_15 = arith.constant 0 : index
    %41 = vector.load %arg3[%c0_14, %c0_15] : memref<16x256xf32, #tpu.memory_space<vmem>>, vector<16x256xf32>
    tpu.vector_store %arg3[%c0_14, %c0_15], %40 {strides = array<i32>} : memref<16x256xf32, #tpu.memory_space<vmem>>, vector<16x256xf32>,
    return
  }
  func.func @transform_0(%arg0: i32) -> (i32, i32) {
    %c0_i32 = arith.constant 0 : i32
    %c0_i32_0 = arith.constant 0 : i32
    return %arg0, %c0_i32 : i32, i32
  }
  func.func @transform_1(%arg0: i32) -> (i32, i32) {
    %c0_i32 = arith.constant 0 : i32
    %c0_i32_0 = arith.constant 0 : i32
    return %arg0, %c0_i32 : i32, i32
  }
  func.func @transform_2(%arg0: i32) -> (i32, i32) {
    %c0_i32 = arith.constant 0 : i32
    %c0_i32_0 = arith.constant 0 : i32
    return %arg0, %c0_i32 : i32, i32
  }
}

</mosaic_0001>

<bundles_post_ra>
// kernel: tpu_custom_call.1
= control target key start
LH: loop header
LB: loop body
LE: loop exit
PB: predicated region body
PF: predicated region fallthrough
CT: control target
= control target key end

     0   :  { %7 = vsyncpa [#allocation3], 0  ;;  %s330_s0 = inlined_call_operand.hbm [shape: f32[16,256], index: 0, kind: input, shape index: {}]   ;;  %s331_s1 = inlined_call_operand.hbm [shape: f32[16,256], index: 1, kind: input, shape index: {}]   ;;  %s332_s2 = inlined_call_operand.hbm [shape: f32[16,256], index: 2, kind: output, shape index: {}]  }
   0x1   :  { %8 = vsyncpa [#allocation6], 0 }
   0x2   :  { %9 = vsyncpa [#allocation4], 0  ;;  %s241_s9 = smov [#allocation2]   ;;  %s169_s13 = scalar_lea.hbm %s330_s0, 512 }
   0x3   :  { %s15_s10 = sshll.u32 %s241_s9, 4  ;;  %p170_p0 = scmp.ne.s32.totalorder %s330_s0, %s169_s13  ;;  %s16_s10 = int_to_ptr.vmem [resolvable:$true] %s15_s10 }
   0x4   :  { %p173_p1 = scmp.lt.u32.totalorder %s169_s13, %s330_s0 }
   0x6   :  { %p175_p2 = pnand %p173_p1, %p170_p0 }
   0x8   :  { %178 = shalt.err (!%p175_p2)
}
   0x9   :  { %s179_s18 = scalar_lea.vmem %s16_s10, 512  ;;  %p184_p4 = scmp.lt.s32.totalorder %s16_s10, %s16_s10 }
   0xa   :  { %p180_p3 = scmp.ne.s32.totalorder %s16_s10, %s179_s18  ;;  %p185_p5 = scmp.lt.s32.totalorder %s179_s18, %s179_s18 }
   0xc   :  { %p186_p6 = por %p185_p5, %p184_p4 }
   0xe   :  { %p187_p7 = pnand %p186_p6, %p180_p3 }
  0x10   :  { %190 = shalt.err (!%p187_p7)
}
  0x11   :  { %s242_s19 = smov 256   ;;  %s243_s20 = smov 16  }
  0x12   :  { %21 = dma.hbm_to_vmem [thread:$0]  %s330_s0, 512, %s16_s10, [#allocation3], %s242_s19, %s242_s19, %s243_s20  }
  0x13   :  { %s244_s23 = smov [#allocation5]   ;;  %s191_s27 = scalar_lea.hbm %s331_s1, 512 }
  0x14   :  { %s27_s24 = sshll.u32 %s244_s23, 4  ;;  %p192_p8 = scmp.ne.s32.totalorder %s331_s1, %s191_s27  ;;  %s28_s24 = int_to_ptr.vmem [resolvable:$true] %s27_s24 }
  0x15   :  { %p195_p9 = scmp.lt.u32.totalorder %s191_s27, %s331_s1 }
  0x17   :  { %p197_p10 = pnand %p195_p9, %p192_p8 }
  0x19   :  { %200 = shalt.err (!%p197_p10)
}
  0x1a   :  { %s201_s4 = scalar_lea.vmem %s28_s24, 512  ;;  %p206_p12 = scmp.lt.s32.totalorder %s28_s24, %s28_s24 }
  0x1b   :  { %p202_p11 = scmp.ne.s32.totalorder %s28_s24, %s201_s4  ;;  %p207_p13 = scmp.lt.s32.totalorder %s201_s4, %s201_s4 }
  0x1d   :  { %p208_p0 = por %p207_p13, %p206_p12 }
  0x1f   :  { %p209_p1 = pnand %p208_p0, %p202_p11 }
  0x21   :  { %212 = shalt.err (!%p209_p1)
}
  0x22   :  { %33 = dma.hbm_to_vmem [thread:$0]  %s331_s1, 512, %s28_s24, [#allocation6], %s242_s19, %s242_s19, %s243_s20  }
  0x23   :  { %235 = dma.done.wait [#allocation3], 512  }
  0x24   :  { %236 = vsyncadd [#allocation3], 4294966784 }
  0x25   :  { %237 = dma.done.wait [#allocation6], 512  }
  0x26   :  { %238 = vsyncadd [#allocation6], 4294966784  ;;  %v44_v0 = vld [vmem:[#allocation5] sm:$0xff]  ;;  %v45_v1 = vld [vmem:[#allocation5 + $0x8] sm:$0xff]  ;;  %s245_s1 = smov [#allocation7]  }
  0x27   :  { %v291_v2 = vld [vmem:[#allocation2] sm:$0xff]  ;;  %v78_v3 = vadd.f32 %v45_v1, %v44_v0  ;;  %v293_v4 = vld [vmem:[#allocation2 + $0x8] sm:$0xff]  ;;  %v46_v5 = vld [vmem:[#allocation5 + $0x10] sm:$0xff]  ;;  %v84_v10 = vmul.f32 %v44_v0, %v44_v0  ;;  %v85_v11 = vmul.f32 %v45_v1, %v45_v1  ;;  %s143_s6 = sshll.u32 %s245_s1, 4  ;;  %s144_s6 = int_to_ptr.vmem [resolvable:$true] %s143_s6 }
  0x28   :  { %v47_v6 = vld [vmem:[#allocation5 + $0x18] sm:$0xff]  ;;  %v48_v7 = vadd.f32 %v293_v4, %v291_v2  ;;  %v297_v8 = vld [vmem:[#allocation2 + $0x10] sm:$0xff]  ;;  %v86_v14 = vmul.f32 %v46_v5, %v46_v5  ;;  %v54_v17 = vmul.f32 %v291_v2, %v291_v2  ;;  %v55_v18 = vmul.f32 %v293_v4, %v293_v4  ;;  %s213_s7 = scalar_lea.vmem %s144_s6, 512  ;;  %p218_p3 = scmp.lt.s32.totalorder %s144_s6, %s144_s6 }
  0x29   :  { %v299_v9 = vld [vmem:[#allocation2 + $0x18] sm:$0xff]  ;;  %79 = vadd.xlane.f32.xlu0 %v78_v3  ;;  %v81_v12 = vadd.f32 %v47_v6, %v46_v5  ;;  %v87_v15 = vmul.f32 %v47_v6, %v47_v6  ;;  %v88_v16 = vadd.f32 %v85_v11, %v84_v10  ;;  %v56_v20 = vmul.f32 %v297_v8, %v297_v8  ;;  %p214_p2 = scmp.ne.s32.totalorder %s144_s6, %s213_s7  ;;  %p219_p4 = scmp.lt.s32.totalorder %s213_s7, %s213_s7 }
  0x2a   :  { %49 = vadd.xlane.f32.xlu1 %v48_v7  ;;  %v51_v13 = vadd.f32 %v299_v9, %v297_v8  ;;  %v57_v21 = vmul.f32 %v299_v9, %v299_v9  ;;  %v58_v22 = vadd.f32 %v55_v18, %v54_v17 }
  0x2b   :  { %v91_v19 = vadd.f32 %v87_v15, %v86_v14  ;;  %p220_p5 = por %p219_p4, %p218_p3 }
  0x2c   :  { %v61_v23 = vadd.f32 %v57_v21, %v56_v20 }
  0x2d   :  { %82 = vadd.xlane.f32.xlu0 %v81_v12  ;;  %p221_p6 = pnand %p220_p5, %p214_p2 }
  0x2e   :  { %52 = vadd.xlane.f32.xlu1 %v51_v13 }
  0x31   :  { %89 = vadd.xlane.f32.xlu0 %v88_v16 }
  0x32   :  { %92 = vadd.xlane.f32.xlu1 %v91_v19 }
  0x35   :  { %59 = vadd.xlane.f32.xlu0 %v58_v22 }
  0x36   :  { %62 = vadd.xlane.f32.xlu1 %v61_v23 }
  0xb6   :  { %v80_v24 = vpop.xlane.xlu0 %79 }
  0xb7   :  { %v50_v25 = vpop.xlane.xlu1 %49  ;;  %v94_v26 = vmul.f32 0.00390625, %v80_v24 }
  0xb8   :  { %v64_v31 = vmul.f32 0.00390625, %v50_v25 }
  0xb9   :  { %v96_v30 = vmul.f32 %v94_v26, %v80_v24 }
  0xba   :  { %v83_v27 = vpop.xlane.xlu0 %82  ;;  %v66_v38 = vmul.f32 %v64_v31, %v50_v25 }
  0xbb   :  { %v95_v28 = vmul.f32 0.00390625, %v83_v27  ;;  %v53_v29 = vpop.xlane.xlu1 %52 }
  0xbc   :  { %v65_v33 = vmul.f32 0.00390625, %v53_v29 }
  0xbd   :  { %v97_v32 = vmul.f32 %v95_v28, %v83_v27 }
  0xbe   :  { %v90_v34 = vpop.xlane.xlu0 %89  ;;  %v67_v40 = vmul.f32 %v65_v33, %v53_v29 }
  0xbf   :  { %v98_v35 = vsub.f32 %v90_v34, %v96_v30  ;;  %v93_v36 = vpop.xlane.xlu1 %92 }
  0xc0   :  { %v99_v37 = vsub.f32 %v93_v36, %v97_v32 }
  0xc1   :  { %v100_v39 = vmul.f32 0.003921569, %v98_v35 }
  0xc2   :  { %v101_v41 = vmul.f32 0.003921569, %v99_v37  ;;  %v60_v42 = vpop.xlane.xlu0 %59 }
  0xc3   :  { %v102_v43 = vmax.f32 %v100_v39, 0.0  ;;  %v68_v44 = vsub.f32 %v60_v42, %v66_v38  ;;  %v63_v45 = vpop.xlane.xlu1 %62 }
  0xc4   :  { %v103_v46 = vmax.f32 %v101_v41, 0.0  ;;  %v69_v47 = vsub.f32 %v63_v45, %v67_v40 }
  0xc5   :  { %v104_v48 = vadd.f32 1e-05, %v102_v43  ;;  %v70_v49 = vmul.f32 0.003921569, %v68_v44 }
  0xc6   :  { %v105_v50 = vadd.f32 1e-05, %v103_v46  ;;  %v71_v51 = vmul.f32 0.003921569, %v69_v47 }
  0xc7   :  { %161 = vrsqrt.f32 %v104_v48  ;;  %v72_v52 = vmax.f32 %v70_v49, 0.0  ;;  %vm108_vm0 = vcmp.eq.f32.partialorder %v104_v48, inf  ;;  %v111_v60 = vand.u32 2147483648, %v104_v48 }
  0xc8   :  { %163 = vrsqrt.f32 %v105_v50  ;;  %v73_v53 = vmax.f32 %v71_v51, 0.0  ;;  %vm110_vm1 = vcmp.eq.f32.partialorder %v104_v48, 0.0  ;;  %vm115_vm2 = vcmp.eq.f32.partialorder %v105_v50, inf }
  0xc9   :  { %v74_v54 = vadd.f32 1e-05, %v72_v52  ;;  %v118_v62 = vand.u32 2147483648, %v105_v50  ;;  %vm117_vm3 = vcmp.eq.f32.partialorder %v105_v50, 0.0 }
  0xca   :  { %v75_v55 = vadd.f32 1e-05, %v73_v53 }
  0xcb   :  { %165 = vrsqrt.f32 %v74_v54 }
  0xcc   :  { %167 = vrsqrt.f32 %v75_v55 }
  0xd1   :  { %v162_v56 = vpop.eup %161 }
  0xd2   :  { %v164_v57 = vpop.eup %163  ;;  %v107_v58 = vmul.f32 %v162_v56, %v104_v48 }
  0xd3   :  { %v114_v59 = vmul.f32 %v164_v57, %v105_v50 }
  0xd4   :  { %v109_v61 = vsel %vm108_vm0, %v104_v48, %v107_v58 }
  0xd5   :  { %v112_v63 = vsel %vm110_vm1, %v111_v60, %v109_v61  ;;  %v116_v0 = vsel %vm115_vm2, %v105_v50, %v114_v59  ;;  %v166_v1 = vpop.eup %165 }
  0xd6   :  { %v119_v3 = vsel %vm117_vm3, %v118_v62, %v116_v0  ;;  %v168_v5 = vpop.eup %167  ;;  %v120_v6 = vmul.f32 %v166_v1, %v112_v63 }
  0xd7   :  { %v121_v7 = vmul.f32 %v168_v5, %v119_v3 }
  0xd8   :  { %v122_v10 = vmul.f32 %v120_v6, %v64_v31  ;;  %v126_v13 = vmul.f32 %v120_v6, %v291_v2  ;;  %v127_v14 = vmul.f32 %v120_v6, %v293_v4 }
  0xd9   :  { %v123_v11 = vmul.f32 %v121_v7, %v65_v33  ;;  %v128_v16 = vmul.f32 %v121_v7, %v297_v8  ;;  %v129_v17 = vmul.f32 %v121_v7, %v299_v9 }
  0xda   :  { %v124_v12 = vsub.f32 %v94_v26, %v122_v10 }
  0xdb   :  { %v125_v15 = vsub.f32 %v95_v28, %v123_v11 }
  0xdc   :  { %v130_v18 = vadd.f32 %v126_v13, %v124_v12  ;;  %v131_v19 = vadd.f32 %v127_v14, %v124_v12 }
  0xdd   :  { %v132_v20 = vadd.f32 %v128_v16, %v125_v15  ;;  %v133_v21 = vadd.f32 %v129_v17, %v125_v15 }
  0xde   :  { %134 = vst [vmem:[#allocation7] sm:$0xff] %v130_v18  ;;  %135 = vst [vmem:[#allocation7 + $0x8] sm:$0xff] %v131_v19 }
  0xdf   :  { %136 = vst [vmem:[#allocation7 + $0x10] sm:$0xff] %v132_v20  ;;  %137 = vst [vmem:[#allocation7 + $0x18] sm:$0xff] %v133_v21 }
  0xe0   :  { %224 = shalt.err (!%p221_p6)
}
  0xe1   :  { %s225_s10 = scalar_lea.hbm %s332_s2, 512 }
  0xe2   :  { %p226_p7 = scmp.ne.s32.totalorder %s332_s2, %s225_s10  ;;  %p229_p8 = scmp.lt.u32.totalorder %s225_s10, %s332_s2 }
  0xe4   :  { %p231_p9 = pnand %p229_p8, %p226_p7 }
  0xe6   :  { %234 = shalt.err (!%p231_p9)
}
  0xe7   :  { %149 = dma.vmem_to_hbm [thread:$0]  %s144_s6, 512, %s332_s2, [#allocation4], %s242_s19, %s242_s19, %s243_s20  }
  0xe8   :  { %239 = dma.done.wait [#allocation4], 512  }
  0xe9   :  { %240 = vsyncadd [#allocation4], 4294966784 }
  0xea   :  { %153 = vsyncpa [#allocation3], 1 }
  0xeb   :  { %154 = vsyncpa [#allocation6], 1 }
  0xec   :  { %155 = vsyncpa [#allocation4], 1 }

</bundles_post_ra>
